<compile_context>
chip_gen: v5e
topology: v5e:2x2
jax: 0.10.0
libtpu: 0.0.40
codegen_flags: <defaults>
</compile_context>

<pallas_src>
import functools

import jax
import jax.numpy as jnp
from jax.experimental import pallas as pl
from jax.experimental.pallas import tpu as pltpu

GAMMA = 2.0
ALPHA = 0.25

_LANES = 128
_SUBLANES = 8
_CHUNK = _LANES * _SUBLANES          # 1024 elements per (8,128) chunk
_TARGET_CHUNKS = 256                 # ~1 MiB f32 per input per tile


def _focal_partial_kernel(logits_ref, targets_ref, loss_out_ref, pos_out_ref,
                          loss_acc, pos_acc, *, gamma, alpha):
    j = pl.program_id(1)

    @pl.when(j == 0)
    def _():
        loss_acc[...] = jnp.zeros_like(loss_acc)
        pos_acc[...] = jnp.zeros_like(pos_acc)

    x = logits_ref[...].astype(jnp.float32)    # (chunk_tile, 8, 128)
    t = targets_ref[...].astype(jnp.float32)

    # One shared exp(-|x|) feeds both the stable BCE log-term and the sigmoid.
    e = jnp.exp(-jnp.abs(x))
    log_term = jnp.log1p(e)                    # softplus(-|x|)
    inv = 1.0 / (1.0 + e)
    p = jnp.where(x >= 0.0, inv, e * inv)      # sigmoid(x), numerically stable

    # binary_cross_entropy_with_logits (reduction='none'):
    #   max(x, 0) - x*t + log(1 + exp(-|x|))
    ce = jnp.maximum(x, 0.0) - x * t + log_term

    p_t = p * t + (1.0 - p) * (1.0 - t)
    one_m_pt = 1.0 - p_t
    if float(gamma) == 2.0:
        focal = one_m_pt * one_m_pt            # square on VPU, no EUP pow
    else:
        focal = one_m_pt ** gamma
    loss = ce * focal
    if alpha >= 0:
        alpha_t = alpha * t + (1.0 - alpha) * (1.0 - t)
        loss = alpha_t * loss

    pos = (t == 1.0).astype(jnp.float32)

    # Per-lane/sublane partial sums (pure VPU adds); cross-lane collapse is
    # deferred to the tiny JAX epilogue.
    loss_acc[...] += jnp.sum(loss, axis=0)
    pos_acc[...] += jnp.sum(pos, axis=0)

    @pl.when(j == pl.num_programs(1) - 1)
    def _():
        loss_out_ref[...] = loss_acc[...]
        pos_out_ref[...] = pos_acc[...]


def focal_with_logits_loss(logits, targets, *, reduction="mean",
                           gamma=GAMMA, alpha=ALPHA):
    """Equivalent of FocalWithLogitsLoss(reduction, gamma, alpha)(logits, targets)."""
    assert logits.shape == targets.shape and logits.ndim == 3
    B, H, W = logits.shape
    S = H * W

    n_chunks = -(-S // _CHUNK)                       # ceil(S / 1024)
    num_tiles = -(-n_chunks // _TARGET_CHUNKS)       # spatial grid extent
    chunk_tile = -(-n_chunks // num_tiles)           # chunks per tile (balanced)
    n_chunks_pad = num_tiles * chunk_tile
    S_pad = n_chunks_pad * _CHUNK

    lf = logits.reshape(B, S)
    tf = targets.reshape(B, S)
    if S_pad != S:
        # logit=-1e9 / target=0 gives exactly 0 loss and 0 positives.
        lf = jnp.pad(lf, ((0, 0), (0, S_pad - S)), constant_values=-1e9)
        tf = jnp.pad(tf, ((0, 0), (0, S_pad - S)), constant_values=0)
    lf = lf.reshape(B, n_chunks_pad, _SUBLANES, _LANES)
    tf = tf.reshape(B, n_chunks_pad, _SUBLANES, _LANES)

    kernel = functools.partial(_focal_partial_kernel, gamma=gamma, alpha=alpha)

    loss_part, pos_part = pl.pallas_call(
        kernel,
        out_shape=(
            jax.ShapeDtypeStruct((B, _SUBLANES, _LANES), jnp.float32),
            jax.ShapeDtypeStruct((B, _SUBLANES, _LANES), jnp.float32),
        ),
        grid_spec=pltpu.PrefetchScalarGridSpec(
            num_scalar_prefetch=0,
            grid=(B, num_tiles),
            in_specs=[
                pl.BlockSpec((None, chunk_tile, _SUBLANES, _LANES),
                             lambda b, j: (b, j, 0, 0)),
                pl.BlockSpec((None, chunk_tile, _SUBLANES, _LANES),
                             lambda b, j: (b, j, 0, 0)),
            ],
            out_specs=[
                pl.BlockSpec((None, _SUBLANES, _LANES), lambda b, j: (b, 0, 0)),
                pl.BlockSpec((None, _SUBLANES, _LANES), lambda b, j: (b, 0, 0)),
            ],
            scratch_shapes=[
                pltpu.VMEM((_SUBLANES, _LANES), jnp.float32),
                pltpu.VMEM((_SUBLANES, _LANES), jnp.float32),
            ],
        ),
        compiler_params=pltpu.CompilerParams(
            dimension_semantics=("parallel", "arbitrary"),
        ),
    )(lf, tf)

    loss_b = jnp.sum(loss_part, axis=(1, 2))                  # (B,)
    if reduction == "sum":
        return jnp.sum(loss_b)
    num_pos = jnp.maximum(jnp.sum(pos_part, axis=(1, 2)), 1.0)
    return jnp.sum(loss_b / num_pos) / B


def _reference(logits, targets, gamma=GAMMA, alpha=ALPHA):
    x = logits.astype(jnp.float32)
    t = targets.astype(jnp.float32)
    p = jax.nn.sigmoid(x)
    ce = jnp.maximum(x, 0.0) - x * t + jnp.log1p(jnp.exp(-jnp.abs(x)))
    p_t = p * t + (1.0 - p) * (1.0 - t)
    loss = ce * (1.0 - p_t) ** gamma
    alpha_t = alpha * t + (1.0 - alpha) * (1.0 - t)
    loss = alpha_t * loss
    num_pos = jnp.maximum(jnp.sum((t == 1.0).astype(jnp.float32), axis=(1, 2)), 1.0)
    loss = jnp.sum(loss, axis=(1, 2))
    return jnp.sum(loss / num_pos) / x.shape[0]


if __name__ == "__main__":
    key = jax.random.PRNGKey(0)
    k1, k2, k3, k4 = jax.random.split(key, 4)

    # Aligned case (no padding path).
    B, H, W = 2, 16, 128
    logits = jax.random.normal(k1, (B, H, W), dtype=jnp.float32) * 2.0
    targets = jax.random.bernoulli(k2, p=0.3, shape=(B, H, W)).astype(jnp.float32)
    out = jax.block_until_ready(focal_with_logits_loss(logits, targets))
    ref = jax.block_until_ready(_reference(logits, targets))
    assert jnp.allclose(out, ref, rtol=1e-5, atol=1e-5), (out, ref)

    # Unaligned case exercising the padding path.
    B2, H2, W2 = 3, 13, 27
    logits2 = jax.random.normal(k3, (B2, H2, W2), dtype=jnp.float32) * 2.0
    targets2 = jax.random.bernoulli(k4, p=0.3, shape=(B2, H2, W2)).astype(jnp.float32)
    out2 = jax.block_until_ready(focal_with_logits_loss(logits2, targets2))
    ref2 = jax.block_until_ready(_reference(logits2, targets2))
    assert jnp.allclose(out2, ref2, rtol=1e-5, atol=1e-5), (out2, ref2)

    print("KERNEL_OK")
</pallas_src>

<mosaic_0001>
module attributes {stable_mosaic.version = 11 : i64} {
  func.func @_focal_partial_kernel(%arg0: i32, %arg1: i32, %arg2: memref<1x2x8x128xf32, #tpu.memory_space<vmem>>, %arg3: memref<1x2x8x128xf32, #tpu.memory_space<vmem>>, %arg4: memref<1x8x128xf32, #tpu.memory_space<vmem>>, %arg5: memref<1x8x128xf32, #tpu.memory_space<vmem>>, %arg6: memref<8x128xf32, #tpu.memory_space<vmem>>, %arg7: memref<8x128xf32, #tpu.memory_space<vmem>>) attributes {dimension_semantics = [#tpu.dimension_semantics<parallel>, #tpu.dimension_semantics<arbitrary>], iteration_bounds = array<i64: 2, 1>, scalar_prefetch = 0 : i64, scratch_operands = 2 : i64, tpu.core_type = #tpu.core_type<tc>, window_params = [{transform_indices = @transform_0, window_bounds = array<i64: 1, 2, 8, 128>}, {transform_indices = @transform_1, window_bounds = array<i64: 1, 2, 8, 128>}, {transform_indices = @transform_2, window_bounds = array<i64: 1, 8, 128>}, {transform_indices = @transform_3, window_bounds = array<i64: 1, 8, 128>}]} {
    %c0_i32 = arith.constant 0 : i32
    %0 = arith.cmpi eq, %arg1, %c0_i32 : i32
    %1 = arith.extui %0 : i1 to i32
    %c0_i32_0 = arith.constant 0 : i32
    %2 = arith.cmpi ne, %1, %c0_i32_0 : i32
    scf.if %2 {
      %cst_31 = arith.constant 0.000000e+00 : f32
      %59 = vector.broadcast %cst_31 : f32 to vector<8x128xf32>
      %c0_32 = arith.constant 0 : index
      %c0_33 = arith.constant 0 : index
      %60 = vector.load %arg6[%c0_32, %c0_33] : memref<8x128xf32, #tpu.memory_space<vmem>>, vector<8x128xf32>
      tpu.vector_store %arg6[%c0_32, %c0_33], %59 {strides = array<i32>} : memref<8x128xf32, #tpu.memory_space<vmem>>, vector<8x128xf32>,
      %cst_34 = arith.constant 0.000000e+00 : f32
      %61 = vector.broadcast %cst_34 : f32 to vector<8x128xf32>
      %c0_35 = arith.constant 0 : index
      %c0_36 = arith.constant 0 : index
      %62 = vector.load %arg7[%c0_35, %c0_36] : memref<8x128xf32, #tpu.memory_space<vmem>>, vector<8x128xf32>
      tpu.vector_store %arg7[%c0_35, %c0_36], %61 {strides = array<i32>} : memref<8x128xf32, #tpu.memory_space<vmem>>, vector<8x128xf32>,
    } else {
    }
    %c0 = arith.constant 0 : index
    %c0_1 = arith.constant 0 : index
    %c0_2 = arith.constant 0 : index
    %c0_3 = arith.constant 0 : index
    %3 = vector.load %arg2[%c0, %c0_1, %c0_2, %c0_3] : memref<1x2x8x128xf32, #tpu.memory_space<vmem>>, vector<1x2x8x128xf32>
    %4 = vector.shape_cast %3 : vector<1x2x8x128xf32> to vector<2x8x128xf32>
    %c0_4 = arith.constant 0 : index
    %c0_5 = arith.constant 0 : index
    %c0_6 = arith.constant 0 : index
    %c0_7 = arith.constant 0 : index
    %5 = vector.load %arg3[%c0_4, %c0_5, %c0_6, %c0_7] : memref<1x2x8x128xf32, #tpu.memory_space<vmem>>, vector<1x2x8x128xf32>
    %6 = vector.shape_cast %5 : vector<1x2x8x128xf32> to vector<2x8x128xf32>
    %7 = math.absf %4 : vector<2x8x128xf32>
    %cst = arith.constant 0.000000e+00 : f32
    %8 = vector.broadcast %cst : f32 to vector<2x8x128xf32>
    %9 = arith.subf %8, %7 : vector<2x8x128xf32>
    %10 = math.exp %9 : vector<2x8x128xf32>
    %11 = math.log1p %10 : vector<2x8x128xf32>
    %cst_8 = arith.constant 1.000000e+00 : f32
    %12 = vector.broadcast %cst_8 : f32 to vector<2x8x128xf32>
    %13 = arith.addf %12, %10 : vector<2x8x128xf32>
    %cst_9 = arith.constant 1.000000e+00 : f32
    %14 = vector.broadcast %cst_9 : f32 to vector<2x8x128xf32>
    %15 = arith.divf %14, %13 : vector<2x8x128xf32>
    %cst_10 = arith.constant 0.000000e+00 : f32
    %16 = vector.broadcast %cst_10 : f32 to vector<2x8x128xf32>
    %17 = arith.cmpf oge, %4, %16 : vector<2x8x128xf32>
    %18 = arith.mulf %10, %15 : vector<2x8x128xf32>
    %19 = arith.select %17, %15, %18 : vector<2x8x128xi1>, vector<2x8x128xf32>
    %cst_11 = arith.constant 0.000000e+00 : f32
    %20 = vector.broadcast %cst_11 : f32 to vector<2x8x128xf32>
    %21 = arith.maximumf %4, %20 : vector<2x8x128xf32>
    %22 = arith.mulf %4, %6 : vector<2x8x128xf32>
    %23 = arith.subf %21, %22 : vector<2x8x128xf32>
    %24 = arith.addf %23, %11 : vector<2x8x128xf32>
    %25 = arith.mulf %19, %6 : vector<2x8x128xf32>
    %cst_12 = arith.constant 1.000000e+00 : f32
    %26 = vector.broadcast %cst_12 : f32 to vector<2x8x128xf32>
    %27 = arith.subf %26, %19 : vector<2x8x128xf32>
    %cst_13 = arith.constant 1.000000e+00 : f32
    %28 = vector.broadcast %cst_13 : f32 to vector<2x8x128xf32>
    %29 = arith.subf %28, %6 : vector<2x8x128xf32>
    %30 = arith.mulf %27, %29 : vector<2x8x128xf32>
    %31 = arith.addf %25, %30 : vector<2x8x128xf32>
    %cst_14 = arith.constant 1.000000e+00 : f32
    %32 = vector.broadcast %cst_14 : f32 to vector<2x8x128xf32>
    %33 = arith.subf %32, %31 : vector<2x8x128xf32>
    %34 = arith.mulf %33, %33 : vector<2x8x128xf32>
    %35 = arith.mulf %24, %34 : vector<2x8x128xf32>
    %cst_15 = arith.constant 2.500000e-01 : f32
    %36 = vector.broadcast %cst_15 : f32 to vector<2x8x128xf32>
    %37 = arith.mulf %36, %6 : vector<2x8x128xf32>
    %cst_16 = arith.constant 1.000000e+00 : f32
    %38 = vector.broadcast %cst_16 : f32 to vector<2x8x128xf32>
    %39 = arith.subf %38, %6 : vector<2x8x128xf32>
    %cst_17 = arith.constant 7.500000e-01 : f32
    %40 = vector.broadcast %cst_17 : f32 to vector<2x8x128xf32>
    %41 = arith.mulf %40, %39 : vector<2x8x128xf32>
    %42 = arith.addf %37, %41 : vector<2x8x128xf32>
    %43 = arith.mulf %42, %35 : vector<2x8x128xf32>
    %cst_18 = arith.constant 1.000000e+00 : f32
    %44 = vector.broadcast %cst_18 : f32 to vector<2x8x128xf32>
    %45 = arith.cmpf oeq, %6, %44 : vector<2x8x128xf32>
    %46 = arith.extui %45 : vector<2x8x128xi1> to vector<2x8x128xi32>
    %47 = arith.sitofp %46 : vector<2x8x128xi32> to vector<2x8x128xf32>
    %c0_19 = arith.constant 0 : index
    %c0_20 = arith.constant 0 : index
    %48 = vector.load %arg6[%c0_19, %c0_20] : memref<8x128xf32, #tpu.memory_space<vmem>>, vector<8x128xf32>
    %cst_21 = arith.constant dense<0.000000e+00> : vector<8x128xf32>
    %49 = vector.multi_reduction <add>, %43, %cst_21 [0] : vector<2x8x128xf32> to vector<8x128xf32>
    %50 = arith.addf %48, %49 : vector<8x128xf32>
    %c0_22 = arith.constant 0 : index
    %c0_23 = arith.constant 0 : index
    %51 = vector.load %arg6[%c0_22, %c0_23] : memref<8x128xf32, #tpu.memory_space<vmem>>, vector<8x128xf32>
    tpu.vector_store %arg6[%c0_22, %c0_23], %50 {strides = array<i32>} : memref<8x128xf32, #tpu.memory_space<vmem>>, vector<8x128xf32>,
    %c0_24 = arith.constant 0 : index
    %c0_25 = arith.constant 0 : index
    %52 = vector.load %arg7[%c0_24, %c0_25] : memref<8x128xf32, #tpu.memory_space<vmem>>, vector<8x128xf32>
    %cst_26 = arith.constant dense<0.000000e+00> : vector<8x128xf32>
    %53 = vector.multi_reduction <add>, %47, %cst_26 [0] : vector<2x8x128xf32> to vector<8x128xf32>
    %54 = arith.addf %52, %53 : vector<8x128xf32>
    %c0_27 = arith.constant 0 : index
    %c0_28 = arith.constant 0 : index
    %55 = vector.load %arg7[%c0_27, %c0_28] : memref<8x128xf32, #tpu.memory_space<vmem>>, vector<8x128xf32>
    tpu.vector_store %arg7[%c0_27, %c0_28], %54 {strides = array<i32>} : memref<8x128xf32, #tpu.memory_space<vmem>>, vector<8x128xf32>,
    %c0_i32_29 = arith.constant 0 : i32
    %56 = arith.cmpi eq, %arg1, %c0_i32_29 : i32
    %57 = arith.extui %56 : i1 to i32
    %c0_i32_30 = arith.constant 0 : i32
    %58 = arith.cmpi ne, %57, %c0_i32_30 : i32
    scf.if %58 {
      %c0_31 = arith.constant 0 : index
      %c0_32 = arith.constant 0 : index
      %59 = vector.load %arg6[%c0_31, %c0_32] : memref<8x128xf32, #tpu.memory_space<vmem>>, vector<8x128xf32>
      %c0_33 = arith.constant 0 : index
      %c0_34 = arith.constant 0 : index
      %c0_35 = arith.constant 0 : index
      %60 = vector.load %arg4[%c0_33, %c0_34, %c0_35] : memref<1x8x128xf32, #tpu.memory_space<vmem>>, vector<1x8x128xf32>
      %61 = vector.shape_cast %60 : vector<1x8x128xf32> to vector<8x128xf32>
      %62 = vector.shape_cast %59 : vector<8x128xf32> to vector<1x8x128xf32>
      tpu.vector_store %arg4[%c0_33, %c0_34, %c0_35], %62 {strides = array<i32>} : memref<1x8x128xf32, #tpu.memory_space<vmem>>, vector<1x8x128xf32>,
      %c0_36 = arith.constant 0 : index
      %c0_37 = arith.constant 0 : index
      %63 = vector.load %arg7[%c0_36, %c0_37] : memref<8x128xf32, #tpu.memory_space<vmem>>, vector<8x128xf32>
      %c0_38 = arith.constant 0 : index
      %c0_39 = arith.constant 0 : index
      %c0_40 = arith.constant 0 : index
      %64 = vector.load %arg5[%c0_38, %c0_39, %c0_40] : memref<1x8x128xf32, #tpu.memory_space<vmem>>, vector<1x8x128xf32>
      %65 = vector.shape_cast %64 : vector<1x8x128xf32> to vector<8x128xf32>
      %66 = vector.shape_cast %63 : vector<8x128xf32> to vector<1x8x128xf32>
      tpu.vector_store %arg5[%c0_38, %c0_39, %c0_40], %66 {strides = array<i32>} : memref<1x8x128xf32, #tpu.memory_space<vmem>>, vector<1x8x128xf32>,
    } else {
    }
    return
  }
  func.func @transform_0(%arg0: i32, %arg1: i32) -> (i32, i32, i32, i32) {
    %c0_i32 = arith.constant 0 : i32
    %c0_i32_0 = arith.constant 0 : i32
    %c0_i32_1 = arith.constant 0 : i32
    return %arg0, %arg1, %c0_i32, %c0_i32_0 : i32, i32, i32, i32
  }
  func.func @transform_1(%arg0: i32, %arg1: i32) -> (i32, i32, i32, i32) {
    %c0_i32 = arith.constant 0 : i32
    %c0_i32_0 = arith.constant 0 : i32
    %c0_i32_1 = arith.constant 0 : i32
    return %arg0, %arg1, %c0_i32, %c0_i32_0 : i32, i32, i32, i32
  }
  func.func @transform_2(%arg0: i32, %arg1: i32) -> (i32, i32, i32) {
    %c0_i32 = arith.constant 0 : i32
    %c0_i32_0 = arith.constant 0 : i32
    %c0_i32_1 = arith.constant 0 : i32
    return %arg0, %c0_i32, %c0_i32_0 : i32, i32, i32
  }
  func.func @transform_3(%arg0: i32, %arg1: i32) -> (i32, i32, i32) {
    %c0_i32 = arith.constant 0 : i32
    %c0_i32_0 = arith.constant 0 : i32
    %c0_i32_1 = arith.constant 0 : i32
    return %arg0, %c0_i32, %c0_i32_0 : i32, i32, i32
  }
}

</mosaic_0001>

<bundles_post_ra>
// kernel: tpu_custom_call.1
= control target key start
LH: loop header
LB: loop body
LE: loop exit
PB: predicated region body
PF: predicated region fallthrough
CT: control target
= control target key end

     0   :  { %s1128_s0 = inlined_call_operand.hbm [shape: f32[2,2,8,128], index: 0, kind: input, shape index: {}]   ;;  %s1129_s1 = inlined_call_operand.hbm [shape: f32[2,2,8,128], index: 1, kind: input, shape index: {}]   ;;  %s1130_s2 = inlined_call_operand.hbm [shape: f32[2,8,128], index: 2, kind: output, shape index: {0}]   ;;  %s1131_s3 = inlined_call_operand.hbm [shape: f32[2,8,128], index: 3, kind: output, shape index: {1}]  }
   0x1   :  { %1132 = sst [smem:[#allocation16_spill]] %s1128_s0 }
   0x2   :  { %9 = vsyncpa [#allocation5], 0 }
   0x3   :  { %11 = vsyncpa [#allocation5 + $0x1], 0 }
   0x4   :  { %12 = vsyncpa [#allocation8], 0 }
   0x5   :  { %14 = vsyncpa [#allocation8 + $0x1], 0 }
   0x6   :  { %15 = vsyncpa [#allocation6], 0 }
   0x7   :  { %17 = vsyncpa [#allocation6 + $0x1], 0 }
   0x8   :  { %18 = vsyncpa [#allocation11], 0 }
   0x9   :  { %20 = vsyncpa [#allocation11 + $0x1], 0  ;;  %s883_s12 = smov 0   ;;  %s885_s13 = smov 0  }
   0xa   :  { %s887_s14 = smov 0   ;;  %s889_s15 = smov 0  }
   0xb   :  { %s891_s16 = smov 0   ;;  %s893_s17 = smov 0  }
   0xc LB: > { %s568_s18 = sadd.s32 4294967295, %s858_s17   ;;  %s569_s19 = sadd.s32 4294967294, %s858_s17   ;;  %s858_s17 = sphi %s893_s17, %s26_s17   ;;  %s854_s16 = sphi %s891_s16, %s1151_s16   ;;  %s850_s15 = sphi %s889_s15, %s1150_s15   ;;  %s846_s14 = sphi %s887_s14, %s1149_s14   ;;  %s842_s13 = sphi %s885_s13, %s1148_s13   ;;  %s838_s12 = sphi %s883_s12, %s1147_s12  }
   0xd   : > { %s38_s20 = sadd.s32 1, %s854_s16  ;;  %s47_s21 = sadd.s32 1, %s846_s14 }
   0xe   : > { %p40_p0 = scmp.ge.s32.totalorder %s38_s20, 2  ;;  %p54_p1 = scmp.ne.s32.totalorder %s846_s14, %s842_s13 }
   0xf   : > { %p55_p2 = scmp.eq.s32.totalorder %s858_s17, 0  ;;  %p60_p3 = scmp.ne.s32.totalorder %s842_s13, %s838_s12 }
  0x10   : > { %s1153_s20 = smov (%p40_p0, %s38_s20), 0  ;;  %p61_p5 = scmp.eq.s32.totalorder %s568_s18, 0 }
  0x11   : > { %p924_p4 = por %p55_p2, %p54_p1  ;;  %s42_s23 = ssub.s32 %s854_s16, %s1153_s20 }
  0x12   : > { %p112_p6 = scmp.eq.s32.totalorder %s568_s18, 1  ;;  %p45_p7 = scmp.eq.s32.totalorder %s42_s23, 0 }
  0x13   : > { %p930_p8 = por %p61_p5, %p60_p3  ;;  %p118_p10 = scmp.eq.s32.totalorder %s569_s19, 1 }
  0x14   : > { %p934_p9 = por %p112_p6, %p54_p1  ;;  %p571_p12 = scmp.ge.s32.totalorder %s858_s17, 2 }
  0x15   : > { %s939_s26 = scalar_select %p45_p7, %s846_s14, %s47_s21  }
  0x16   : > { %p941_p11 = por %p118_p10, %p60_p3  ;;  %p615_p13 = scmp.lt.s32.totalorder %s858_s17, 2 }
  0x17   : > { %s948_s28 = sand.u32 1, %s846_s14   ;;  %s591_s30 = sshll.u32 %s854_s16, 4 }
  0x18   : > { %s572_s29 = sshll.u32 %s948_s28, 4  ;;  %s1137_s0 = sld [smem:[#allocation16_spill]] }
  0x19   : > { %s168_s7 = scalar_lea.vmem [#allocation4], %s572_s29  ;;  %p957_p0 = pnand %p615_p13, %p924_p4 }
  0x1a   : > { %s178_s8 = sshll.u32 %s168_s7, 4  ;;  %p578_p1 = scmp.ge.s32.totalorder %s858_s17, 1  ;;  %s179_s8 = int_to_ptr.vmem [resolvable:$true] %s178_s8 }
  0x1b   : > { %s165_s11 = scalar_lea.sflag [#allocation5], %s948_s28  ;;  %s860_s18 = smov 128  }
  0x1c   : > { %s861_s19 = smov 8   ;;  %p210_p2 = scmp.lt.s32.totalorder %s858_s17, 3 }
  0x1d   : > { %s199_s4 = scalar_lea.hbm %s1129_s1, %s591_s30  ;;  %s192_s22 = scalar_lea.vmem [#allocation7], %s572_s29 }
  0x1e   : > { %s175_s6 = scalar_lea.hbm %s1137_s0, %s591_s30  ;;  %p211_p3 = pnand %p578_p1, %p210_p2 }
  0x1f   : > { %s176_s9 = sshll.u32 %s175_s6, 4  ;;  %s200_s5 = sshll.u32 %s199_s4, 4  ;;  %s177_s9 = int_to_ptr.hbm [resolvable:$true] %s176_s9  ;;  %s201_s5 = int_to_ptr.hbm [resolvable:$true] %s200_s5 }
  0x20   : > { %604 = dma.hbm_to_vmem [thread:$0]  (!%p957_p0), %s177_s9, 256, %s179_s8, %s165_s11, %s860_s18, %s860_s18, %s861_s19  }
  0x21   : > { %s202_s6 = sshll.u32 %s192_s22, 4  ;;  %s189_s7 = scalar_lea.sflag [#allocation8], %s948_s28  ;;  %s203_s6 = int_to_ptr.vmem [resolvable:$true] %s202_s6 }
  0x22   : > { %607 = dma.hbm_to_vmem [thread:$0]  (!%p957_p0), %s201_s5, 256, %s203_s6, %s189_s7, %s860_s18, %s860_s18, %s861_s19  }
  0x23   : > { %214 = sbr.rel (%p211_p3) target bundleno = 100 (0x64), region = 28  ;;  %s973_s0 = sand.u32 (!%p211_p3), 1, %s842_s13  }
  0x24   : > { %s579_s8 = sshll.u32 (!%p211_p3), %s973_s0, 4  ;;  %s217_s9 = scalar_lea.sflag (!%p211_p3), [#allocation5], %s973_s0 }
  0x25   : > { %s220_s11 = scalar_lea.vmem (!%p211_p3), [#allocation4], %s579_s8 }
  0x28   : > { %821 = dma.done.wait (%p930_p8), %s217_s9, 256  }
  0x29   : > { %823 = vsyncadd (%p930_p8), %s217_s9, 4294967040  ;;  %s227_s28 = scalar_lea.sflag [#allocation8], %s973_s0  ;;  %s230_s29 = scalar_lea.vmem [#allocation7], %s579_s8 }
  0x2a   : > { %825 = dma.done.wait (%p930_p8), %s227_s28, 256  }
  0x2b   : > { %827 = vsyncadd (%p930_p8), %s227_s28, 4294967040  ;;  %v986_v0 = vld [vmem:[%s220_s11] sm:$0xff]  ;;  %v988_v1 = vld [vmem:[%s220_s11 + $0x8] sm:$0xff]  ;;  %s581_s24 = sshll.u32 %s973_s0, 3  ;;  %s587_s30 = sshll.u32 %s850_s15, 3  ;;  %v862_v14 = vmov 0.0  }
  0x2c   : > { %v276_v2 = vand.u32 2147483647, %v986_v0  ;;  %v277_v3 = vand.u32 2147483647, %v988_v1  ;;  %s423_s19 = scalar_lea.hbm %s1131_s3, %s587_s30  ;;  %v1008_v12 = vld [vmem:[%s230_s29] sm:$0xff]  ;;  %v1010_v13 = vld [vmem:[%s230_s29 + $0x8] sm:$0xff] }
  0x2d   : > { %s263_s21 = scalar_lea.vmem [#allocation10], %s581_s24  ;;  %vm372_vm0 = vcmp.eq.f32.partialorder %v1008_v12, 1.0  ;;  %vm373_vm1 = vcmp.eq.f32.partialorder %v1010_v13, 1.0  ;;  %s427_s4 = sshll.u32 %s423_s19, 4  ;;  %s428_s4 = int_to_ptr.hbm [resolvable:$true] %s427_s4 }
  0x2e   : > { %v278_v4 = vsub.f32 0.0, %v276_v2  ;;  %v279_v5 = vsub.f32 0.0, %v277_v3  ;;  %s425_s23 = sshll.u32 %s263_s21, 4  ;;  %v583_v15 = vsel %vm372_vm0, 1.0, %v862_v14  ;;  %v584_v16 = vsel %vm373_vm1, 1.0, %v862_v14  ;;  %s399_s5 = scalar_lea.sflag [#allocation11], %s973_s0  ;;  %s1016_s23 = int_to_ptr.vmem [resolvable:$true] %s425_s23 }
  0x2f   : > { %v383_v18 = vadd.f32 %v584_v16, %v583_v15  ;;  %s754_s22 = sshra.s32 %s428_s4, 4  ;;  %s760_s9 = scalar_lea.hbm %s1131_s3, 16  ;;  %s755_s22 = int_to_ptr.hbm [resolvable:$true] %s754_s22 }
  0x30   : > { %v280_v6 = vmul.f32 1.442695, %v278_v4  ;;  %v282_v7 = vmul.f32 1.442695, %v279_v5  ;;  %s756_s6 = scalar_lea.hbm %s755_s22, 8  ;;  %p761_p7 = scmp.lt.s32.totalorder %s755_s22, %s1131_s3 }
  0x31   : > { %392 = vst [vmem:[%s263_s21] sm:$0xff] %v383_v18  ;;  %p757_p4 = scmp.ne.s32.totalorder %s755_s22, %s756_s6  ;;  %p762_p8 = scmp.lt.s32.totalorder %s760_s9, %s756_s6 }
  0x32   : > { %668 = vpow2.f32 %v280_v6 }
  0x33   : > { %670 = vpow2.f32 %v282_v7  ;;  %p758_p5 = pnand %p757_p4, %p934_p9  ;;  %p763_p10 = por %p762_p8, %p761_p7 }
  0x35   : > { %p759_p6 = pneg %p758_p5 }
  0x37   : > { %p764_p13 = pnand %p763_p10, %p759_p6 }
  0x38   : > { %v992_v8 = vpop.eup %668 }
  0x39   : > { %v994_v9 = vpop.eup %670  ;;  %v284_v10 = vadd.f32 1.0, %v992_v8 }
  0x3a   : > { %v999_v11 = vadd.f32 1.0, %v994_v9 }
  0x3b   : > { %672 = vrcp.f32 %v284_v10  ;;  %vm309_vm2 = vweird.f32 %v284_v10  ;;  %v315_v21 = vand.u32 2147483648, %v284_v10  ;;  %v313_v24 = vand.u32 2147483647, %v284_v10 }
  0x3c   : > { %674 = vrcp.f32 %v999_v11  ;;  %v330_v25 = vand.u32 2147483648, %v999_v11 }
  0x3d   : > { %676 = vlog2.f32 %v284_v10 }
  0x41   : > { %v673_v17 = vpop.eup %672 }
  0x42   : > { %v675_v19 = vpop.eup %674  ;;  %v305_v20 = vmul.f32 %v673_v17, %v284_v10  ;;  %vm310_vm3 = vweird.f32 %v673_v17 }
  0x43   : > { %v320_v22 = vmul.f32 %v675_v19, %v999_v11 }
  0x44   : > { %v306_v23 = vsub.f32 1.0, %v305_v20 }
  0x45   : > { %767 = shalt.err (!%p764_p13)
}
  0x46   : > { %598 = dma.vmem_to_hbm [thread:$0]  (%p934_p9), %s1016_s23, 128, %s428_s4, %s399_s5   ;;  %v321_v26 = vsub.f32 1.0, %v320_v22  ;;  %vm324_vm4 = vweird.f32 %v999_v11  ;;  %vm325_vm5 = vweird.f32 %v675_v19  ;;  %v328_v27 = vand.u32 2147483647, %v999_v11  ;;  %vm1039_vm6 = vmor %vm309_vm2, %vm310_vm3  ;;  %v677_v37 = vpop.eup %676 }
  0x47   : > { %v287_v28 = vmul.f32 -0.5, %v992_v8  ;;  %678 = vlog2.f32 %v999_v11  ;;  %v296_v29 = vmul.f32 -0.5, %v994_v9  ;;  %v307_v30 = vmul.f32 %v673_v17, %v306_v23  ;;  %vm1043_vm8 = vmor %vm324_vm4, %vm325_vm5  ;;  %s409_s18 = scalar_lea.hbm %s1130_s2, %s587_s30  ;;  %s256_s19 = scalar_lea.vmem [#allocation9], %s581_s24 }
  0x48   : > { %v316_v32 = vor.u32 1.1754944e-38, %v315_v21  ;;  %v322_v33 = vmul.f32 %v675_v19, %v321_v26  ;;  %vm314_vm7 = vcmp.eq.f32.partialorder %v313_v24, 8.507059e+37  ;;  %v331_v36 = vor.u32 1.1754944e-38, %v330_v25  ;;  %s411_s21 = sshll.u32 %s256_s19, 4  ;;  %s413_s23 = sshll.u32 %s409_s18, 4  ;;  %s412_s21 = int_to_ptr.vmem [resolvable:$true] %s411_s21  ;;  %s414_s23 = int_to_ptr.hbm [resolvable:$true] %s413_s23 }
  0x49   : > { %v308_v34 = vadd.f32 %v673_v17, %v307_v30  ;;  %vm334_vm9 = vcmp.ge.f32.partialorder %v986_v0, 0.0  ;;  %v290_v38 = vand.u32 2147483647, %v992_v8  ;;  %vm329_vm10 = vcmp.eq.f32.partialorder %v328_v27, 8.507059e+37  ;;  %s394_s4 = scalar_lea.sflag [#allocation6], %s973_s0  ;;  %s782_s5 = sshra.s32 %s414_s23, 4  ;;  %s783_s5 = int_to_ptr.hbm [resolvable:$true] %s782_s5 }
  0x4a   : > { %v323_v39 = vadd.f32 %v675_v19, %v322_v33  ;;  %vm335_vm11 = vcmp.ge.f32.partialorder %v988_v1, 0.0  ;;  %v288_v40 = vadd.f32 1.0, %v287_v28  ;;  %v297_v41 = vadd.f32 1.0, %v296_v29  ;;  %s784_s15 = scalar_lea.hbm %s783_s5, 8  ;;  %s788_s6 = scalar_lea.hbm %s1130_s2, 16 }
  0x4b   : > { %v312_v42 = vsel %vm1039_vm6, %v673_v17, %v308_v34  ;;  %v340_v43 = vmax.f32 %v986_v0, 0.0  ;;  %v341_v46 = vmax.f32 %v988_v1, 0.0  ;;  %v342_v47 = vmul.f32 %v1008_v12, %v986_v0  ;;  %p785_p0 = scmp.ne.s32.totalorder %s783_s5, %s784_s15  ;;  %p789_p3 = scmp.lt.s32.totalorder %s783_s5, %s1130_s2 }
  0x4c   : > { %v317_v44 = vsel %vm314_vm7, %v316_v32, %v312_v42  ;;  %v327_v45 = vsel %vm1043_vm8, %v675_v19, %v323_v39  ;;  %v299_v49 = vand.u32 2147483647, %v994_v9  ;;  %v343_v52 = vmul.f32 %v1010_v13, %v988_v1  ;;  %p790_p4 = scmp.lt.s32.totalorder %s788_s6, %s784_s15 }
  0x4d   : > { %v679_v48 = vpop.eup %678  ;;  %v332_v50 = vsel %vm329_vm10, %v331_v36, %v327_v45  ;;  %v336_v51 = vmul.f32 %v992_v8, %v317_v44  ;;  %vm1062_vm12 = vcmp.lt.f32.partialorder %v290_v38, 0.0004427343  ;;  %v352_v55 = vsub.f32 1.0, %v1008_v12  ;;  %p786_p1 = pnand %p785_p0, %p934_p9 }
  0x4e   : > { %v337_v54 = vmul.f32 %v994_v9, %v332_v50  ;;  %v353_v56 = vsub.f32 1.0, %v1010_v13  ;;  %v286_v57 = vmul.f32 0.6931472, %v677_v37  ;;  %v289_v58 = vmul.f32 %v992_v8, %v288_v40  ;;  %p791_p5 = por %p790_p4, %p789_p3 }
  0x4f   : > { %v298_v59 = vmul.f32 %v994_v9, %v297_v41  ;;  %v338_v60 = vsel %vm334_vm9, %v317_v44, %v336_v51  ;;  %v295_v61 = vmul.f32 0.6931472, %v679_v48  ;;  %vm1076_vm13 = vcmp.lt.f32.partialorder %v299_v49, 0.0004427343  ;;  %p787_p2 = pneg %p786_p1 }
  0x50   : > { %v339_v62 = vsel %vm335_vm11, %v332_v50, %v337_v54  ;;  %v348_v63 = vmul.f32 %v338_v60, %v1008_v12  ;;  %v350_v2 = vsub.f32 1.0, %v338_v60  ;;  %v344_v6 = vsub.f32 %v340_v43, %v342_v47 }
  0x51   : > { %v349_v4 = vmul.f32 %v339_v62, %v1010_v13  ;;  %v351_v5 = vsub.f32 1.0, %v339_v62  ;;  %v292_v0 = vsel %vm1062_vm12, %v289_v58, %v286_v57  ;;  %v345_v8 = vsub.f32 %v341_v46, %v343_v52  ;;  %p792_p6 = pnand %p791_p5, %p787_p2 }
  0x52   : > { %v354_v7 = vmul.f32 %v352_v55, %v350_v2  ;;  %v301_v1 = vsel %vm1076_vm13, %v298_v59, %v295_v61  ;;  %v364_v11 = vmul.f32 0.25, %v1008_v12  ;;  %v366_v14 = vmul.f32 0.75, %v352_v55 }
  0x53   : > { %v355_v9 = vmul.f32 %v353_v56, %v351_v5  ;;  %v365_v16 = vmul.f32 0.25, %v1010_v13  ;;  %v367_v17 = vmul.f32 0.75, %v353_v56  ;;  %v346_v18 = vadd.f32 %v344_v6, %v292_v0 }
  0x54   : > { %v356_v10 = vadd.f32 %v354_v7, %v348_v63  ;;  %v347_v20 = vadd.f32 %v345_v8, %v301_v1  ;;  %v368_v23 = vadd.f32 %v366_v14, %v364_v11 }
  0x55   : > { %v357_v15 = vadd.f32 %v355_v9, %v349_v4  ;;  %v369_v25 = vadd.f32 %v367_v17, %v365_v16 }
  0x56   : > { %v358_v19 = vsub.f32 1.0, %v356_v10 }
  0x57   : > { %v359_v21 = vsub.f32 1.0, %v357_v15 }
  0x58   : > { %v360_v22 = vmul.f32 %v358_v19, %v358_v19 }
  0x59   : > { %v361_v24 = vmul.f32 %v359_v21, %v359_v21 }
  0x5a   : > { %v362_v12 = vmul.f32 %v360_v22, %v346_v18 }
  0x5b   : > { %v363_v26 = vmul.f32 %v361_v24, %v347_v20 }
  0x5c   : > { %v370_v27 = vmul.f32 %v368_v23, %v362_v12 }
  0x5d   : > { %v371_v13 = vmul.f32 %v369_v25, %v363_v26 }
  0x5f   : > { %v379_v28 = vadd.f32 %v371_v13, %v370_v27 }
  0x61   : > { %390 = vst [vmem:[%s256_s19] sm:$0xff] %v379_v28 }
  0x62   : > { %795 = shalt.err (!%p792_p6)
}
  0x63   : > { %597 = dma.vmem_to_hbm [thread:$0]  (%p934_p9), %s412_s21, 128, %s414_s23, %s394_s4  }
  0x64 PF: > { %s439_s0 = sand.u32 1, %s838_s12   ;;  %p609_p7 = pnand %p571_p12, %p941_p11 }
  0x65   : > { %s440_s8 = scalar_lea.sflag [#allocation6], %s439_s0 }
  0x66   : > { %p610_p8 = pneg %p609_p7 }
  0x68   : > { %829 = dma.done.wait (%p610_p8), %s440_s8, 128  }
  0x69   : > { %831 = vsyncadd (%p610_p8), %s440_s8, 4294967168  ;;  %s450_s9 = scalar_lea.sflag [#allocation11], %s439_s0 }
  0x6a   : > { %833 = dma.done.wait (%p610_p8), %s450_s9, 128  }
  0x6b   : > { %835 = vsyncadd (%p610_p8), %s450_s9, 4294967168  ;;  %s26_s17 = sadd.s32 1, %s858_s17   ;;  %s1147_s12 = smov %s842_s13 }
  0x6c   : > { %p23_p10 = scmp.ge.s32.totalorder %s26_s17, 4   ;;  %s1148_s13 = smov %s846_s14 }
  0x6d   : > { %s1149_s14 = smov %s939_s26  ;;  %s1150_s15 = smov %s854_s16 }
  0x6e   : > { %s1151_s16 = smov %s1153_s20  ;;  %25 = sbr.rel (!%p23_p10) target bundleno = 12 (0xc), region = 111 }
  0x73   :  { %456 = vsyncpa [#allocation5], 1 }
  0x74   :  { %458 = vsyncpa [#allocation5 + $0x1], 1 }
  0x75   :  { %459 = vsyncpa [#allocation8], 1 }
  0x76   :  { %461 = vsyncpa [#allocation8 + $0x1], 1 }
  0x77   :  { %462 = vsyncpa [#allocation6], 1 }
  0x78   :  { %464 = vsyncpa [#allocation6 + $0x1], 1 }
  0x79   :  { %465 = vsyncpa [#allocation11], 1 }
  0x7a   :  { %467 = vsyncpa [#allocation11 + $0x1], 1 }

</bundles_post_ra>
